<compile_context>
chip_gen: v5e
topology: v5e:2x2
jax: 0.10.0
libtpu: 0.0.40
codegen_flags: <defaults>
</compile_context>

<pallas_src>
import math

import jax
import jax.numpy as jnp
from jax.experimental import pallas as pl
from jax.experimental.pallas import tpu as pltpu

B, C, T, H = 2, 8, 128, 32      # batch, channels, sequence length, hidden width
BC, BH = B * C, B * H           # batch folded into the sublane (row) axis
INV_N = 1.0 / (B * C * T)       # compile-time constant for the mean reduction
HALF_PI = math.pi / 2.0


def vdiffusion_kernel(sig_ref,            # SMEM (B,) f32
                      x_ref, n_ref,       # VMEM (B*C, T)
                      p1_ref,             # VMEM (B*H, B*C + 2) = [W1blk | ws | b1+bs]
                      p2_ref,             # VMEM (B*C, B*H + 1) = [W2blk | b2]
                      o_ref):             # SMEM (1, 1) scalar loss
    s0 = sig_ref[0]
    s1 = sig_ref[1]   # TODO(synk): generalize the per-batch select beyond B=2

    # per-batch sigma/alpha/beta columns built in-kernel (EUP cos/sin is ~free here)
    row_c = jax.lax.broadcasted_iota(jnp.int32, (BC, 1), 0)
    sig_c = jnp.where(row_c < C, s0, s1)            # (B*C, 1)
    alpha = jnp.cos(sig_c * HALF_PI)
    beta = jnp.sin(sig_c * HALF_PI)

    x = x_ref[...]                                  # (B*C, T)
    noise = n_ref[...]

    # diffusion mixing (elementwise hot path, both batches at once)
    x_noisy = alpha * x + beta * noise
    v_target = alpha * noise - beta * x

    # synthetic net, block-diagonal over batch:
    #   pointwise conv -> +sigma embedding -> ReLU -> pointwise conv
    w1 = p1_ref[:, :BC]                             # (B*H, B*C)
    ws_col = p1_ref[:, BC:BC + 1]                   # (B*H, 1)
    b1_col = p1_ref[:, BC + 1:BC + 2]               # (B*H, 1)  (= b1 + bs, tiled)
    row_h = jax.lax.broadcasted_iota(jnp.int32, (BH, 1), 0)
    sig_h = jnp.where(row_h < H, s0, s1)            # (B*H, 1)

    h = jnp.dot(w1, x_noisy, preferred_element_type=jnp.float32)     # (B*H, T)
    h = jnp.maximum(h + ws_col * sig_h + b1_col, 0.0)

    w2 = p2_ref[:, :BH]                             # (B*C, B*H)
    b2_col = p2_ref[:, BH:BH + 1]                   # (B*C, 1)
    v_pred = jnp.dot(w2, h, preferred_element_type=jnp.float32) + b2_col

    # full MSE reduction in-kernel, scalar straight to SMEM
    err = v_pred - v_target
    o_ref[0, 0] = jnp.sum(err * err) * INV_N


def pack_params(params):
    """One-time parameter packing: block-diagonal weights + fused bias columns."""
    w1, b1, ws, bs, w2, b2 = params
    z1 = jnp.zeros_like(w1)
    z2 = jnp.zeros_like(w2)
    w1blk = jnp.concatenate(
        [jnp.concatenate([w1, z1], axis=1),
         jnp.concatenate([z1, w1], axis=1)], axis=0)                 # (B*H, B*C)
    w2blk = jnp.concatenate(
        [jnp.concatenate([w2, z2], axis=1),
         jnp.concatenate([z2, w2], axis=1)], axis=0)                 # (B*C, B*H)
    ws_col = jnp.concatenate([ws, ws], axis=0)                       # (B*H, 1)
    b1_col = jnp.concatenate([b1 + bs, b1 + bs], axis=0)             # (B*H, 1)
    b2_col = jnp.concatenate([b2, b2], axis=0)                       # (B*C, 1)
    p1 = jnp.concatenate([w1blk, ws_col, b1_col], axis=1)            # (B*H, B*C+2)
    p2 = jnp.concatenate([w2blk, b2_col], axis=1)                    # (B*C, B*H+1)
    return p1, p2


@jax.jit
def diffusion_forward(x, noise, sigmas, p1, p2):
    """Returns the scalar MSE loss (reduction='mean'), matching F.mse_loss."""
    # (B,C,T) -> (B*C,T): contiguous reshape, no transpose -> free under jit
    x2d = x.reshape(BC, T)
    n2d = noise.reshape(BC, T)

    smem = pl.BlockSpec(memory_space=pltpu.MemorySpace.SMEM)
    vmem = pl.BlockSpec(memory_space=pltpu.MemorySpace.VMEM)

    loss = pl.pallas_call(
        vdiffusion_kernel,
        out_shape=jax.ShapeDtypeStruct((1, 1), jnp.float32),
        in_specs=[smem, vmem, vmem, vmem, vmem],
        out_specs=smem,
    )(sigmas, x2d, n2d, p1, p2)
    return loss[0, 0]


def reference(x, noise, sigmas, params):
    w1, b1, ws, bs, w2, b2 = params
    alphas = jnp.cos(sigmas * HALF_PI)[:, None, None]
    betas = jnp.sin(sigmas * HALF_PI)[:, None, None]
    x_noisy = alphas * x + betas * noise
    v_target = alphas * noise - betas * x
    h = (jnp.einsum('hc,bct->bht', w1, x_noisy)
         + b1[None]
         + (ws[None] * sigmas[:, None, None] + bs[None]))
    h = jnp.maximum(h, 0.0)
    v_pred = jnp.einsum('ch,bht->bct', w2, h) + b2[None]
    return jnp.mean((v_pred - v_target) ** 2)


if __name__ == "__main__":
    key = jax.random.PRNGKey(0)
    ks = jax.random.split(key, 8)

    x = jax.random.normal(ks[0], (B, C, T), jnp.float32)
    noise = jax.random.normal(ks[1], (B, C, T), jnp.float32)        # randn_like(x)
    sigmas = jax.random.uniform(ks[2], (B,), jnp.float32)           # UniformDistribution

    # deterministic synthetic net parameters
    w1 = jax.random.normal(ks[3], (H, C), jnp.float32) * 0.1
    b1 = jnp.zeros((H, 1), jnp.float32)
    ws = jax.random.normal(ks[4], (H, 1), jnp.float32) * 0.1
    bs = jax.random.normal(ks[5], (H, 1), jnp.float32) * 0.1
    w2 = jax.random.normal(ks[6], (C, H), jnp.float32) * 0.1
    b2 = jnp.zeros((C, 1), jnp.float32)
    params = (w1, b1, ws, bs, w2, b2)

    p1, p2 = pack_params(params)            # one-time packing, outside the hot path

    loss = jax.block_until_ready(diffusion_forward(x, noise, sigmas, p1, p2))
    ref = reference(x, noise, sigmas, params)

    assert abs(float(loss) - float(ref)) <= 1e-4 * max(1.0, abs(float(ref))), (
        f"mismatch: pallas={float(loss)} ref={float(ref)}")
    print("KERNEL_OK")
</pallas_src>

<mosaic_0001>
module attributes {stable_mosaic.version = 11 : i64} {
  func.func @vdiffusion_kernel(%arg0: memref<2xf32, #tpu.memory_space<smem>>, %arg1: memref<16x128xf32, #tpu.memory_space<vmem>>, %arg2: memref<16x128xf32, #tpu.memory_space<vmem>>, %arg3: memref<64x18xf32, #tpu.memory_space<vmem>>, %arg4: memref<16x65xf32, #tpu.memory_space<vmem>>, %arg5: memref<1x1xf32, #tpu.memory_space<smem>>) attributes {dimension_semantics = [], scalar_prefetch = 0 : i64, scratch_operands = 0 : i64, tpu.core_type = #tpu.core_type<tc>} {
    %c0 = arith.constant 0 : index
    %0 = memref.load %arg0[%c0] : memref<2xf32, #tpu.memory_space<smem>>
    %c1 = arith.constant 1 : index
    %1 = memref.load %arg0[%c1] : memref<2xf32, #tpu.memory_space<smem>>
    %2 = tpu.iota {dimensions = array<i32: 0>} : vector<16x1xi32>
    %c8_i32 = arith.constant 8 : i32
    %3 = vector.broadcast %c8_i32 : i32 to vector<16x1xi32>
    %4 = arith.cmpi slt, %2, %3 : vector<16x1xi32>
    %5 = vector.broadcast %0 : f32 to vector<16x1xf32>
    %6 = vector.broadcast %1 : f32 to vector<16x1xf32>
    %7 = arith.select %4, %5, %6 : vector<16x1xi1>, vector<16x1xf32>
    %cst = arith.constant 1.57079637 : f32
    %8 = vector.broadcast %cst : f32 to vector<16x1xf32>
    %9 = arith.mulf %7, %8 : vector<16x1xf32>
    %10 = math.cos %9 : vector<16x1xf32>
    %cst_0 = arith.constant 1.57079637 : f32
    %11 = vector.broadcast %cst_0 : f32 to vector<16x1xf32>
    %12 = arith.mulf %7, %11 : vector<16x1xf32>
    %13 = math.sin %12 : vector<16x1xf32>
    %c0_1 = arith.constant 0 : index
    %c0_2 = arith.constant 0 : index
    %14 = vector.load %arg1[%c0_1, %c0_2] : memref<16x128xf32, #tpu.memory_space<vmem>>, vector<16x128xf32>
    %c0_3 = arith.constant 0 : index
    %c0_4 = arith.constant 0 : index
    %15 = vector.load %arg2[%c0_3, %c0_4] : memref<16x128xf32, #tpu.memory_space<vmem>>, vector<16x128xf32>
    %16 = vector.broadcast %10 : vector<16x1xf32> to vector<16x128xf32>
    %17 = arith.mulf %16, %14 : vector<16x128xf32>
    %18 = vector.broadcast %13 : vector<16x1xf32> to vector<16x128xf32>
    %19 = arith.mulf %18, %15 : vector<16x128xf32>
    %20 = arith.addf %17, %19 : vector<16x128xf32>
    %21 = vector.broadcast %10 : vector<16x1xf32> to vector<16x128xf32>
    %22 = arith.mulf %21, %15 : vector<16x128xf32>
    %23 = vector.broadcast %13 : vector<16x1xf32> to vector<16x128xf32>
    %24 = arith.mulf %23, %14 : vector<16x128xf32>
    %25 = arith.subf %22, %24 : vector<16x128xf32>
    %c0_5 = arith.constant 0 : index
    %c0_6 = arith.constant 0 : index
    %26 = vector.load %arg3[%c0_5, %c0_6] : memref<64x18xf32, #tpu.memory_space<vmem>>, vector<64x16xf32>
    %c0_7 = arith.constant 0 : index
    %c16 = arith.constant 16 : index
    %27 = vector.load %arg3[%c0_7, %c16] : memref<64x18xf32, #tpu.memory_space<vmem>>, vector<64x1xf32>
    %c0_8 = arith.constant 0 : index
    %c17 = arith.constant 17 : index
    %28 = vector.load %arg3[%c0_8, %c17] : memref<64x18xf32, #tpu.memory_space<vmem>>, vector<64x1xf32>
    %29 = tpu.iota {dimensions = array<i32: 0>} : vector<64x1xi32>
    %c32_i32 = arith.constant 32 : i32
    %30 = vector.broadcast %c32_i32 : i32 to vector<64x1xi32>
    %31 = arith.cmpi slt, %29, %30 : vector<64x1xi32>
    %32 = vector.broadcast %0 : f32 to vector<64x1xf32>
    %33 = vector.broadcast %1 : f32 to vector<64x1xf32>
    %34 = arith.select %31, %32, %33 : vector<64x1xi1>, vector<64x1xf32>
    %cst_9 = arith.constant dense<0.000000e+00> : vector<64x128xf32>
    %35 = tpu.matmul %26, %20, %cst_9 {dimension_numbers = #tpu.dot_dimension_numbers<[1], [0], [0], [1], [0, 0, 1, 1], [], []>} : vector<64x16xf32>, vector<16x128xf32>, vector<64x128xf32> -> vector<64x128xf32>
    %36 = arith.mulf %27, %34 : vector<64x1xf32>
    %37 = vector.broadcast %36 : vector<64x1xf32> to vector<64x128xf32>
    %38 = arith.addf %35, %37 : vector<64x128xf32>
    %39 = vector.broadcast %28 : vector<64x1xf32> to vector<64x128xf32>
    %40 = arith.addf %38, %39 : vector<64x128xf32>
    %cst_10 = arith.constant 0.000000e+00 : f32
    %41 = vector.broadcast %cst_10 : f32 to vector<64x128xf32>
    %42 = arith.maximumf %40, %41 : vector<64x128xf32>
    %c0_11 = arith.constant 0 : index
    %c0_12 = arith.constant 0 : index
    %43 = vector.load %arg4[%c0_11, %c0_12] : memref<16x65xf32, #tpu.memory_space<vmem>>, vector<16x64xf32>
    %c0_13 = arith.constant 0 : index
    %c64 = arith.constant 64 : index
    %44 = vector.load %arg4[%c0_13, %c64] : memref<16x65xf32, #tpu.memory_space<vmem>>, vector<16x1xf32>
    %cst_14 = arith.constant dense<0.000000e+00> : vector<16x128xf32>
    %45 = tpu.matmul %43, %42, %cst_14 {dimension_numbers = #tpu.dot_dimension_numbers<[1], [0], [0], [1], [0, 0, 1, 1], [], []>} : vector<16x64xf32>, vector<64x128xf32>, vector<16x128xf32> -> vector<16x128xf32>
    %46 = vector.broadcast %44 : vector<16x1xf32> to vector<16x128xf32>
    %47 = arith.addf %45, %46 : vector<16x128xf32>
    %48 = arith.subf %47, %25 : vector<16x128xf32>
    %49 = arith.mulf %48, %48 : vector<16x128xf32>
    %50 = vector.shape_cast %49 : vector<16x128xf32> to vector<1x16x128xf32>
    %cst_15 = arith.constant dense<0.000000e+00> : vector<1xf32>
    %51 = vector.multi_reduction <add>, %50, %cst_15 [1, 2] : vector<1x16x128xf32> to vector<1xf32>
    %52 = vector.shape_cast %51 : vector<1xf32> to vector<1x1x1xf32>
    %53 = vector.extract %52[0, 0, 0] : f32 from vector<1x1x1xf32>
    %cst_16 = arith.constant 4.8828125E-4 : f32
    %54 = arith.mulf %53, %cst_16 : f32
    %c0_17 = arith.constant 0 : index
    %c0_18 = arith.constant 0 : index
    %55 = memref.load %arg5[%c0_17, %c0_18] : memref<1x1xf32, #tpu.memory_space<smem>>
    memref.store %54, %arg5[%c0_17, %c0_18] : memref<1x1xf32, #tpu.memory_space<smem>>
    return
  }
}

</mosaic_0001>

<bundles_post_ra>
// kernel: diffusion_forward.1
= control target key start
LH: loop header
LB: loop body
LE: loop exit
PB: predicated region body
PF: predicated region fallthrough
CT: control target
= control target key end

     0   :  { %10 = vsyncpa [#allocation4], 0  ;;  %s1367_s0 = inlined_call_operand.vmem [shape: f32[2], index: 0, kind: input, shape index: {}]   ;;  %s1368_s1 = inlined_call_operand.vmem [shape: f32[16,128], index: 1, kind: input, shape index: {}]   ;;  %s1369_s2 = inlined_call_operand.vmem [shape: f32[16,128], index: 2, kind: input, shape index: {}]   ;;  %s1370_s3 = inlined_call_operand.vmem [shape: f32[64,18], index: 3, kind: input, shape index: {}]   ;;  %s1371_s4 = inlined_call_operand.vmem [shape: f32[16,65], index: 4, kind: input, shape index: {}]   ;;  %s1372_s5 = inlined_call_operand.hbm [shape: f32[1,1], index: 5, kind: output, shape index: {}]  }
   0x1   :  { %11 = vsyncpa [#allocation3], 0  ;;  %s17_s20 = sshll.u32 %s1367_s0, 4  ;;  %s1036_s21 = smov [#allocation2]   ;;  %s18_s20 = int_to_ptr.vmem [resolvable:$true] %s17_s20 }
   0x2   :  { %20 = dma.vmem_to_smem %s18_s20, 16, %s1036_s21, [#allocation4]  }
   0x3   :  { %1032 = dma.done.wait [#allocation4], 16  }
   0x4   :  { %1033 = vsyncadd [#allocation4], 4294967280 }
   0x5   :  { %33 = sfence }
   0x6   :  { %v1084_v0 = vld [vmem:[%s1370_s3 + $0x38] sm:$0xff]  ;;  %s946_s24 = sld [smem:[#allocation2 + $0x1]]  ;;  %v1037_v1 = vmov 17   ;;  %v1038_v2 = vmov 16   ;;  %v1093_v3 = vld [vmem:[%s1370_s3 + $0x28] sm:$0xff]  ;;  %s1047_s26 = smov [#allocation5]  }
   0x7   :  { %995 = vset.pattern.permute.xlu1 %v1037_v1  ;;  %996 = vset.pattern.permute.xlu2 %v1037_v1  ;;  %s34_s0 = sld [smem:[#allocation2]]  ;;  %v1039_v29 = vmov 683565275   ;;  %v1040_v31 = vmov 2475754826  }
   0x8   :  { %854 = vperm.xlu1 %995, %v1084_v0   ;;  %997 = vset.pattern.permute.xlu0 %v1038_v2  ;;  %v1041_v33 = vmov 2131351028   ;;  %v1042_v35 = vmov 2102212464   ;;  %v1043_v37 = vmov 920167782  }
   0x9   :  { %v1044_v44 = vmov 1326507024  }
   0xc   :  { %v1095_v4 = vstv %s946_s24  ;;  %s935_s24 = sshll.u32 %s1372_s5, 4  ;;  %s936_s24 = int_to_ptr.hbm [resolvable:$true] %s935_s24 }
   0xd   :  { %v716_v5 = vmul.f32 %v1093_v3, %v1095_v4  ;;  %v1100_v6 = vmul.f32 1.5707964, %v1095_v4  ;;  %v1104_v9 = vstv %s34_s0 }
   0xe   :  { %v1108_v10 = vmul.f32 1.5707964, %v1104_v9 }
   0xf   :  { %v204_v7 = vand.u32 2139095040, %v1100_v6  ;;  %v201_v8 = vand.u32 2147483647, %v1100_v6 }
  0x10   :  { %999 = vset.pattern.permute.xlu1 %v1038_v2  ;;  %v47_v13 = vand.u32 2147483647, %v1108_v10  ;;  %v50_v14 = vand.u32 2139095040, %v1108_v10 }
  0x11   :  { %746 = vperm.xlu1 %999, %v716_v5   ;;  %v205_v11 = vshrl.u32 %v204_v7, 23  ;;  %v208_v12 = vand.u32 8388607, %v201_v8 }
  0x12   :  { %v51_v17 = vshrl.u32 %v50_v14, 23  ;;  %v54_v21 = vand.u32 8388607, %v47_v13 }
  0x13   :  { %v950_v15 = vadd.s32 4294967169, %v205_v11  ;;  %v209_v16 = vor.u32 8388608, %v208_v12 }
  0x14   :  { %v947_v20 = vadd.s32 4294967169, %v51_v17  ;;  %v55_v27 = vor.u32 8388608, %v54_v21 }
  0x15   :  { %v211_v18 = vadd.s32 1, %v950_v15  ;;  %v1114_v19 = vshll.u32 %v209_v16, 8 }
  0x16   :  { %v57_v23 = vadd.s32 1, %v947_v20  ;;  %v1135_v5 = vshll.u32 %v55_v27, 8 }
  0x17   :  { %vm212_vm0 = vcmp.gt.s32.totalorder %v211_v18, 0  ;;  %v250_v26 = vand.u32 65535, %v1114_v19  ;;  %v251_v63 = vshrl.u32 %v1114_v19, 16 }
  0x18   :  { %v213_v22 = vsel %vm212_vm0, %v211_v18, 0  ;;  %vm58_vm2 = vcmp.gt.s32.totalorder %v57_v23, 0 }
  0x19   :  { %v214_v24 = vshrl.u32 %v213_v22, 5  ;;  %v215_v25 = vand.u32 31, %v213_v22  ;;  %v59_v49 = vsel %vm58_vm2, %v57_v23, 0 }
  0x1a   :  { %v1126_v52 = vand.u32 31, %v59_v49  ;;  %v1142_v14 = vshrl.u32 %v59_v49, 5  ;;  %v1045_v49 = vmov 0  }
  0x1b   :  { %v216_v28 = vsub.s32 32, %v215_v25  ;;  %v218_v30 = vshll.u32 %v1039_v29, %v215_v25  ;;  %v221_v32 = vshll.u32 %v1040_v31, %v215_v25  ;;  %v224_v34 = vshll.u32 %v1041_v33, %v215_v25 }
  0x1c   :  { %v227_v36 = vshll.u32 %v1042_v35, %v215_v25  ;;  %v230_v38 = vshll.u32 %v1043_v37, %v215_v25  ;;  %vm233_vm1 = vcmp.lt.s32.totalorder %v214_v24, 1  ;;  %vm234_vm3 = vcmp.lt.s32.totalorder %v214_v24, 2 }
  0x1d   :  { %v217_v39 = vshrl.u32 %v1039_v29, %v216_v28  ;;  %v219_v40 = vshrl.u32 %v1040_v31, %v216_v28  ;;  %v222_v41 = vshrl.u32 %v1041_v33, %v216_v28  ;;  %v225_v42 = vshrl.u32 %v1042_v35, %v216_v28 }
  0x1e   :  { %v228_v43 = vshrl.u32 %v1043_v37, %v216_v28  ;;  %v231_v45 = vshrl.u32 %v1044_v44, %v216_v28  ;;  %vm236_vm4 = vcmp.lt.s32.totalorder %v214_v24, 4  ;;  %vm235_vm5 = vcmp.lt.s32.totalorder %v214_v24, 3 }
  0x1f   :  { %v220_v46 = vor.u32 %v219_v40, %v218_v30  ;;  %v223_v47 = vor.u32 %v222_v41, %v221_v32  ;;  %v226_v48 = vor.u32 %v225_v42, %v224_v34  ;;  %v1132_v60 = vsub.s32 32, %v1126_v52 }
  0x20   :  { %v229_v50 = vor.u32 %v228_v43, %v227_v36  ;;  %v232_v51 = vor.u32 %v231_v45, %v230_v38  ;;  %v64_v20 = vshll.u32 %v1039_v29, %v1126_v52  ;;  %v67_v22 = vshll.u32 %v1040_v31, %v1126_v52 }
  0x21   :  { %v237_v53 = vsel %vm233_vm1, %v217_v39, %v220_v46  ;;  %v238_v54 = vsel %vm236_vm4, %v226_v48, 2102212464  ;;  %v241_v55 = vsel %vm233_vm1, %v220_v46, %v223_v47  ;;  %v245_v56 = vsel %vm233_vm1, %v223_v47, %v226_v48 }
  0x22   :  { %v239_v57 = vsel %vm235_vm5, %v223_v47, %v238_v54  ;;  %v242_v58 = vsel %vm236_vm4, %v229_v50, 920167782  ;;  %v246_v59 = vsel %vm236_vm4, %v232_v51, 1326507024  ;;  %v65_v21 = vshrl.u32 %v1040_v31, %v1132_v60 }
  0x23   :  { %v243_v61 = vsel %vm235_vm5, %v226_v48, %v242_v58  ;;  %v247_v62 = vsel %vm235_vm5, %v229_v50, %v246_v59  ;;  %v1138_v7 = vsel %vm234_vm3, %v237_v53, %v239_v57  ;;  %v68_v23 = vshrl.u32 %v1041_v33, %v1132_v60 }
  0x24   :  { %v244_v11 = vsel %vm234_vm3, %v241_v55, %v243_v61  ;;  %v248_v12 = vsel %vm234_vm3, %v245_v56, %v247_v62  ;;  %v70_v24 = vshll.u32 %v1041_v33, %v1126_v52  ;;  %v1150_v48 = vor.u32 %v65_v21, %v64_v20 }
  0x25   :  { %v252_v15 = vand.u32 65535, %v248_v12  ;;  %v253_v16 = vshrl.u32 %v248_v12, 16  ;;  %v274_v17 = vand.u32 65535, %v244_v11  ;;  %v275_v18 = vshrl.u32 %v244_v11, 16 }
  0x26   :  { %v73_v54 = vshll.u32 %v1042_v35, %v1126_v52  ;;  %v1159_v57 = vor.u32 %v68_v23, %v67_v22  ;;  %v74_v62 = vshrl.u32 %v1043_v37, %v1132_v60  ;;  %v76_v11 = vshll.u32 %v1043_v37, %v1126_v52 }
  0x27   :  { %v254_v25 = vmul.u32 %v252_v15, %v250_v26  ;;  %v255_v27 = vmul.u32 %v253_v16, %v250_v26  ;;  %v256_v28 = vmul.u32 %v252_v15, %v251_v63  ;;  %v257_v30 = vmul.u32 %v253_v16, %v251_v63 }
  0x28   :  { %v276_v32 = vmul.u32 %v274_v17, %v250_v26  ;;  %v277_v34 = vmul.u32 %v275_v18, %v250_v26  ;;  %v278_v36 = vmul.u32 %v274_v17, %v251_v63  ;;  %v279_v41 = vmul.u32 %v275_v18, %v251_v63 }
  0x29   :  { %v258_v38 = vshll.u32 %v255_v27, 16  ;;  %v259_v39 = vshrl.u32 %v255_v27, 16  ;;  %v260_v40 = vshll.u32 %v256_v28, 16  ;;  %v261_v42 = vshrl.u32 %v256_v28, 16 }
  0x2a   :  { %v280_v43 = vshll.u32 %v277_v34, 16  ;;  %v281_v45 = vshrl.u32 %v277_v34, 16  ;;  %v282_v46 = vshll.u32 %v278_v36, 16  ;;  %v283_v47 = vshrl.u32 %v278_v36, 16 }
  0x2b   :  { %vm262_vm6 = vc.u32 %v254_v25, %v258_v38  ;;  %v264_v31 = vadd.s32 %v258_v38, %v254_v25  ;;  %v71_v26 = vshrl.u32 %v1042_v35, %v1132_v60  ;;  %v77_v35 = vshrl.u32 %v1044_v44, %v1132_v60 }
  0x2c   :  { %v263_v33 = vsel %vm262_vm6, 1, %v1045_v49  ;;  %vm284_vm7 = vc.u32 %v276_v32, %v280_v43  ;;  %v286_v50 = vadd.s32 %v280_v43, %v276_v32  ;;  %vm79_vm10 = vcmp.lt.s32.totalorder %v1142_v14, 1 }
  0x2d   :  { %v265_v51 = vadd.s32 %v263_v33, %v257_v30  ;;  %vm266_vm8 = vc.u32 %v264_v31, %v260_v40  ;;  %v285_v53 = vsel %vm284_vm7, 1, %v1045_v49  ;;  %v72_v61 = vor.u32 %v71_v26, %v70_v24 }
  0x2e   :  { %v267_v55 = vsel %vm266_vm8, 1, %v1045_v49  ;;  %v287_v56 = vadd.s32 %v285_v53, %v279_v41  ;;  %vm288_vm9 = vc.u32 %v286_v50, %v282_v46  ;;  %v1169_v15 = vadd.s32 %v286_v50, %v282_v46 }
  0x2f   :  { %v269_v58 = vadd.s32 %v267_v55, %v265_v51  ;;  %v289_v59 = vsel %vm288_vm9, 1, %v1045_v49  ;;  %v75_v16 = vor.u32 %v74_v62, %v73_v54  ;;  %vm81_vm11 = vcmp.lt.s32.totalorder %v1142_v14, 3 }
  0x30   :  { %v291_v63 = vadd.s32 %v289_v59, %v287_v56  ;;  %v78_v18 = vor.u32 %v77_v35, %v76_v11  ;;  %vm80_vm12 = vcmp.lt.s32.totalorder %v1142_v14, 2  ;;  %vm82_vm13 = vcmp.lt.s32.totalorder %v1142_v14, 4 }
  0x31   :  { %v270_v12 = vadd.s32 %v269_v58, %v259_v39  ;;  %v87_v37 = vsel %vm79_vm10, %v1150_v48, %v1159_v57  ;;  %v88_v44 = vsel %vm82_vm13, %v75_v16, 920167782  ;;  %v96_v22 = vand.u32 65535, %v1135_v5 }
  0x32   :  { %v292_v17 = vadd.s32 %v291_v63, %v281_v45  ;;  %v89_v21 = vsel %vm81_vm11, %v72_v61, %v88_v44  ;;  %v97_v23 = vshrl.u32 %v1135_v5, 16  ;;  %v294_v25 = vmul.u32 %v1114_v19, %v1138_v7 }
  0x33   :  { %v1174_v20 = vadd.s32 %v270_v12, %v261_v42  ;;  %v90_v27 = vsel %vm80_vm12, %v87_v37, %v89_v21  ;;  %v91_v28 = vsel %vm79_vm10, %v1159_v57, %v72_v61  ;;  %v92_v30 = vsel %vm82_vm13, %v78_v18, 1326507024 }
  0x34   :  { %v293_v52 = vadd.s32 %v292_v17, %v283_v47  ;;  %v120_v32 = vand.u32 65535, %v90_v27  ;;  %v121_v34 = vshrl.u32 %v90_v27, 16  ;;  %v93_v36 = vsel %vm81_vm11, %v75_v16, %v92_v30 }
  0x35   :  { %vm296_vm14 = vc.u32 %v1174_v20, %v1169_v15  ;;  %v94_v7 = vsel %vm80_vm12, %v91_v28, %v93_v36  ;;  %v63_v59 = vshrl.u32 %v1039_v29, %v1132_v60  ;;  %v84_v63 = vsel %vm82_vm13, %v72_v61, 2102212464 }
  0x36   :  { %v297_v24 = vadd.s32 1, %v293_v52  ;;  %v123_v38 = vmul.u32 %v121_v34, %v96_v22  ;;  %v98_v40 = vand.u32 65535, %v94_v7  ;;  %v99_v41 = vshrl.u32 %v94_v7, 16 }
  0x37   :  { %v124_v42 = vmul.u32 %v120_v32, %v97_v23  ;;  %v122_v43 = vmul.u32 %v120_v32, %v96_v22  ;;  %v125_v55 = vmul.u32 %v121_v34, %v97_v23  ;;  %v85_v27 = vsel %vm81_vm11, %v1159_v57, %v84_v63 }
  0x38   :  { %v298_v19 = vsel %vm296_vm14, %v297_v24, %v293_v52  ;;  %v126_v45 = vshll.u32 %v123_v38, 16  ;;  %v100_v31 = vmul.u32 %v98_v40, %v96_v22  ;;  %v101_v47 = vmul.u32 %v99_v41, %v96_v22 }
  0x39   :  { %v299_v39 = vadd.s32 %v298_v19, %v294_v25  ;;  %v102_v33 = vmul.u32 %v98_v40, %v97_v23  ;;  %v128_v50 = vshll.u32 %v124_v42, 16  ;;  %v103_v51 = vmul.u32 %v99_v41, %v97_v23 }
  0x3a   :  { %v104_v53 = vshll.u32 %v101_v47, 16  ;;  %vm130_vm15 = vc.u32 %v122_v43, %v126_v45  ;;  %v132_v56 = vadd.s32 %v126_v45, %v122_v43  ;;  %v105_v16 = vshrl.u32 %v101_v47, 16 }
  0x3b   :  { %v300_v46 = vadd.s32 536870912, %v299_v39  ;;  %v106_v54 = vshll.u32 %v102_v33, 16  ;;  %v131_v35 = vsel %vm130_vm15, 1, %v1045_v49  ;;  %v127_v37 = vshrl.u32 %v123_v38, 16 }
  0x3c   :  { %vm108_vm0 = vc.u32 %v100_v31, %v104_v53  ;;  %v110_v62 = vadd.s32 %v104_v53, %v100_v31  ;;  %vm134_vm1 = vc.u32 %v132_v56, %v128_v50  ;;  %v133_v44 = vadd.s32 %v131_v35, %v125_v55 }
  0x3d   :  { %v1201_v26 = vshrl.u32 %v300_v46, 30  ;;  %v109_v11 = vsel %vm108_vm0, 1, %v1045_v49  ;;  %v135_v29 = vsel %vm134_vm1, 1, %v1045_v49  ;;  %v107_v52 = vshrl.u32 %v102_v33, 16 }
  0x3e   :  { %v111_v17 = vadd.s32 %v109_v11, %v103_v51  ;;  %vm112_vm2 = vc.u32 %v110_v62, %v106_v54  ;;  %v129_v61 = vshrl.u32 %v124_v42, 16  ;;  %v137_v22 = vadd.s32 %v135_v29, %v133_v44 }
  0x3f   :  { %v302_v58 = vshll.u32 %v1201_v26, 30  ;;  %v113_v18 = vsel %vm112_vm2, 1, %v1045_v49  ;;  %v83_v25 = vsel %vm79_vm10, %v63_v59, %v1150_v48  ;;  %v136_v49 = vadd.s32 %v132_v56, %v128_v50 }
  0x40   :  { %v115_v21 = vadd.s32 %v113_v18, %v111_v17  ;;  %v138_v30 = vadd.s32 %v137_v22, %v127_v37  ;;  %v86_v36 = vsel %vm80_vm12, %v83_v25, %v85_v27  ;;  %v295_v7 = vadd.s32 %v1169_v15, %v1174_v20 }
  0x41   :  { %v303_v12 = vsub.s32 %v299_v39, %v302_v58  ;;  %v140_v39 = vmul.u32 %v1135_v5, %v86_v36  ;;  %vm203_vm6 = vcmp.lt.s32.totalorder %v1100_v6, 0  ;;  %v325_v5 = vsub.s32 4, %v1201_v26 }
  0x42   :  { %v116_v28 = vadd.s32 %v115_v21, %v105_v16  ;;  %v139_v19 = vadd.s32 %v138_v30, %v129_v61  ;;  %vm202_vm7 = vcmp.le.f32.partialorder %v201_v8, 0.7853982  ;;  %vm344_vm0 = vweird.f32 %v1100_v6 }
  0x43   :  { %vm304_vm3 = vcmp.lt.s32.totalorder %v303_v12, 0  ;;  %v305_v60 = vsub.s32 0, %v303_v12  ;;  %v326_v59 = vsel %vm203_vm6, %v325_v5, %v1201_v26  ;;  %vm49_vm1 = vcmp.lt.s32.totalorder %v1108_v10, 0 }
  0x44   :  { %v117_v32 = vadd.s32 %v116_v28, %v107_v52  ;;  %v143_v38 = vadd.s32 1, %v139_v19  ;;  %vm48_vm2 = vcmp.le.f32.partialorder %v47_v13, 0.7853982 }
  0x45   :  { %v306_v23 = vsel %vm304_vm3, %v305_v60, %v303_v12 }
  0x46   :  { %v307_v24 = vclz %v306_v23  ;;  %vm142_vm5 = vc.u32 %v117_v32, %v136_v49  ;;  %v141_v29 = vadd.s32 %v136_v49, %v117_v32 }
  0x47   :  { %v144_v45 = vsel %vm142_vm5, %v143_v38, %v139_v19 }
  0x48   :  { %v951_v34 = vadd.s32 4294967294, %v307_v24  ;;  %v145_v46 = vadd.s32 %v144_v45, %v140_v39 }
  0x4a   :  { %vm952_vm4 = vcmp.lt.s32.totalorder %v951_v34, 0  ;;  %v146_v47 = vadd.s32 536870912, %v145_v46 }
  0x4b   :  { %v310_v48 = vsel %vm952_vm4, 0, %v951_v34 }
  0x4c   :  { %v311_v57 = vsub.s32 32, %v310_v48  ;;  %v312_v40 = vshll.u32 %v303_v12, %v310_v48  ;;  %v315_v41 = vsub.s32 4294967266, %v310_v48  ;;  %v1223_v51 = vshrl.u32 %v146_v47, 30 }
  0x4d   :  { %v328_v12 = vsel %vm202_vm7, 0, %v326_v59 }
  0x4e   :  { %v313_v42 = vshrl.u32 %v295_v7, %v311_v57  ;;  %v316_v43 = vadd.s32 127, %v315_v41  ;;  %v148_v20 = vshll.u32 %v1223_v51, 30  ;;  %v654_v8 = vadd.s32 3, %v328_v12 }
  0x4f   :  { %v345_v28 = vand.u32 3, %v328_v12 }
  0x50   :  { %v314_v31 = vor.u32 %v313_v42, %v312_v40  ;;  %v317_v14 = vshll.u32 %v316_v43, 23  ;;  %v149_v54 = vsub.s32 %v145_v46, %v148_v20  ;;  %v655_v24 = vand.u32 3, %v654_v8 }
  0x51   :  { %vm350_vm10 = vcmp.eq.s32.totalorder %v345_v28, 2  ;;  %vm346_vm12 = vcmp.lt.s32.totalorder %v345_v28, 2  ;;  %vm347_vm13 = vcmp.eq.s32.totalorder %v345_v28, 0  ;;  %v171_v46 = vsub.s32 4, %v1223_v51 }
  0x52   :  { %v318_v33 = vor.u32 4788187, %v317_v14  ;;  %v321_v50 = vcvt.s32.f32 %v314_v31  ;;  %vm150_vm8 = vcmp.lt.s32.totalorder %v149_v54, 0  ;;  %v151_v56 = vsub.s32 0, %v149_v54  ;;  %v1238_v31 = vld [vmem:[%s1370_s3 + $0x18] sm:$0xff]  ;;  %v1243_v14 = vld [vmem:[%s1370_s3 + $0x30] sm:$0xff] }
  0x53   :  { %vm660_vm11 = vcmp.eq.s32.totalorder %v655_v24, 2  ;;  %vm657_vm14 = vcmp.eq.s32.totalorder %v655_v24, 0  ;;  %vm656_vm15 = vcmp.lt.s32.totalorder %v655_v24, 2  ;;  %v714_v20 = vmul.f32 %v1238_v31, %v1104_v9  ;;  %850 = vperm.xlu2 %996, %v1243_v14  }
  0x54   :  { %v319_v15 = vand.u32 2147483647, %v318_v33  ;;  %v152_v63 = vsel %vm150_vm8, %v151_v56, %v149_v54 }
  0x55   :  { %v153_v35 = vclz %v152_v63  ;;  %736 = vperm.xlu1 %999, %v714_v20   ;;  %v172_v63 = vsel %vm49_vm1, %v171_v46, %v1223_v51 }
  0x56   :  { %v322_v53 = vmul.f32 %v321_v50, %v319_v15  ;;  %v1248_v50 = vld [vmem:[%s1368_s1 + $0x8] sm:$0xff]  ;;  %v174_v12 = vsel %vm48_vm2, 0, %v172_v63 }
  0x57   :  { %v948_v18 = vadd.s32 4294967294, %v153_v35  ;;  %v1253_v15 = vld [vmem:[%s1369_s2 + $0x8] sm:$0xff] }
  0x58   :  { %v323_v55 = vxor.u32 2147483648, %v322_v53 }
  0x59   :  { %vm949_vm9 = vcmp.lt.s32.totalorder %v948_v18, 0 }
  0x5a   :  { %v324_v58 = vsel %vm203_vm6, %v323_v55, %v322_v53  ;;  %v156_v60 = vsel %vm949_vm9, 0, %v948_v18  ;;  %v718_v53 = vmul.f32 %v1084_v0, %v1095_v4  ;;  %v1285_v18 = vld [vmem:[%s1370_s3 + $0x20] sm:$0xff]  ;;  %vm190_vm9 = vweird.f32 %v1108_v10 }
  0x5b   :  { %v327_v62 = vsel %vm202_vm7, %v1100_v6, %v324_v58  ;;  %v157_v61 = vsub.s32 32, %v156_v60  ;;  %v158_v22 = vshll.u32 %v149_v54, %v156_v60  ;;  %v161_v26 = vsub.s32 4294967266, %v156_v60  ;;  %1000 = vset.pattern.permute.xlu2 %v1038_v2 }
  0x5c   :  { %v329_v11 = vmul.f32 %v327_v62, %v327_v62  ;;  %756 = vperm.xlu0 %997, %v718_v53  }
  0x5d   :  { %v159_v27 = vshrl.u32 %v141_v29, %v157_v61  ;;  %v162_v30 = vadd.s32 127, %v161_v26  ;;  %v715_v29 = vmul.f32 %v1285_v18, %v1095_v4 }
  0x5e   :  { %v330_v16 = vmul.f32 -0.001358992, %v329_v11  ;;  %v337_v17 = vmul.f32 -0.00019511016, %v329_v11 }
  0x5f   :  { %v160_v19 = vor.u32 %v159_v27, %v158_v22  ;;  %v163_v7 = vshll.u32 %v162_v30, 23  ;;  %741 = vperm.xlu2 %1000, %v715_v29  }
  0x60   :  { %v331_v37 = vadd.f32 0.041655596, %v330_v16  ;;  %v338_v44 = vadd.f32 0.008332121, %v337_v17 }
  0x61   :  { %v164_v49 = vor.u32 4788187, %v163_v7  ;;  %v167_v48 = vcvt.s32.f32 %v160_v19 }
  0x62   :  { %v332_v52 = vmul.f32 %v331_v37, %v329_v11  ;;  %v339_v21 = vmul.f32 %v338_v44, %v329_v11  ;;  %v1290_v37 = vld [vmem:[%s1370_s3 + $0x10] sm:$0xff]  ;;  %v717_v44 = vmul.f32 %v1243_v14, %v1095_v4 }
  0x63   :  { %v165_v40 = vand.u32 2147483647, %v164_v49  ;;  %v713_v51 = vmul.f32 %v1290_v37, %v1104_v9  ;;  %v1309_v49 = vld [vmem:[%s1368_s1] sm:$0xff] }
  0x64   :  { %v333_v23 = vadd.f32 -0.4999988, %v332_v52  ;;  %v340_v25 = vadd.f32 -0.16666654, %v339_v21  ;;  %v499_v52 = vadd.s32 3, %v174_v12  ;;  %751 = vperm.xlu0 %997, %v717_v44  }
  0x65   :  { %v168_v45 = vmul.f32 %v167_v48, %v165_v40  ;;  %731 = vperm.xlu1 %999, %v713_v51   ;;  %v1314_v48 = vld [vmem:[%s1369_s2] sm:$0xff] }
  0x66   :  { %v334_v34 = vmul.f32 %v333_v23, %v329_v11  ;;  %v341_v36 = vmul.f32 %v340_v25, %v329_v11  ;;  %v191_v23 = vand.u32 3, %v174_v12  ;;  %v500_v25 = vand.u32 3, %v499_v52 }
  0x67   :  { %v169_v55 = vxor.u32 2147483648, %v168_v45  ;;  %1001 = vset.pattern.permute.xlu2 %v1037_v1 }
  0x68   :  { %v335_v38 = vadd.f32 1.0, %v334_v34  ;;  %v342_v32 = vadd.f32 1.0, %v341_v36  ;;  %vm196_vm3 = vcmp.eq.s32.totalorder %v191_v23, 2  ;;  %vm505_vm4 = vcmp.eq.s32.totalorder %v500_v25, 2  ;;  %842 = vperm.xlu2 %1001, %v1285_v18  }
  0x69   :  { %v170_v13 = vsel %vm49_vm1, %v169_v55, %v168_v45  ;;  %vm192_vm5 = vcmp.lt.s32.totalorder %v191_v23, 2  ;;  %vm193_vm6 = vcmp.eq.s32.totalorder %v191_v23, 0  ;;  %vm502_vm7 = vcmp.eq.s32.totalorder %v500_v25, 0 }
  0x6a   :  { %v343_v39 = vmul.f32 %v342_v32, %v327_v62  ;;  %v351_v57 = vxor.u32 2147483648, %v335_v38  ;;  %v173_v11 = vsel %vm48_vm2, %v1108_v10, %v170_v13  ;;  %vm501_vm8 = vcmp.lt.s32.totalorder %v500_v25, 2 }
  0x6b   :  { %v175_v35 = vmul.f32 %v173_v11, %v173_v11 }
  0x6c   :  { %v348_v41 = vxor.u32 2147483648, %v343_v39  ;;  %v352_v42 = vsel %vm350_vm10, %v351_v57, %v343_v39  ;;  %v662_v43 = vsel %vm660_vm11, %v351_v57, %v343_v39  ;;  %998 = vset.pattern.permute.xlu0 %v1037_v1  ;;  %v682_v39 = vld [vmem:[%s1370_s3 + $0x8] sm:$0xff]  ;;  %vm759_vm10 = vcmask 130048  }
  0x6d   :  { %v176_v16 = vmul.f32 -0.001358992, %v175_v35  ;;  %v183_v17 = vmul.f32 -0.00019511016, %v175_v35  ;;  %1003 = vset.pattern.permute.xlu1 %v1037_v1  ;;  %846 = vperm.xlu0 %998, %v1093_v3   ;;  %v712_v10 = vmul.f32 %v682_v39, %v1104_v9  ;;  %vm885_vm11 = vcmask 523264  }
  0x6e   :  { %v349_v47 = vsel %vm347_vm13, %v335_v38, %v348_v41  ;;  %v659_v33 = vsel %vm657_vm14, %v335_v38, %v348_v41  ;;  %834 = vperm.xlu1 %1003, %v1290_v37  }
  0x6f   :  { %v353_v5 = vsel %vm346_vm12, %v349_v47, %v352_v42  ;;  %v663_v54 = vsel %vm656_vm15, %v659_v33, %v662_v43  ;;  %v177_v8 = vadd.f32 0.041655596, %v176_v16  ;;  %v184_v60 = vadd.f32 0.008332121, %v183_v17  ;;  %v681_v47 = vld [vmem:[%s1370_s3] sm:$0xff] }
  0x70   :  { %v1266_v56 = vsel %vm344_vm0, nan, %v353_v5  ;;  %v1270_v58 = vsel %vm344_vm0, nan, %v663_v54  ;;  %838 = vperm.xlu2 %1001, %v1238_v31   ;;  %v711_v33 = vmul.f32 %v681_v47, %v1104_v9 }
  0x71   :  { %v670_v59 = vmul.f32 %v1248_v50, %v1266_v56  ;;  %v672_v62 = vmul.f32 %v1253_v15, %v1270_v58  ;;  %v178_v21 = vmul.f32 %v177_v8, %v175_v35  ;;  %v185_v61 = vmul.f32 %v184_v60, %v175_v35 }
  0x73   :  { %v674_v6 = vadd.f32 %v672_v62, %v670_v59  ;;  %v179_v22 = vadd.f32 -0.4999988, %v178_v21  ;;  %v186_v26 = vadd.f32 -0.16666654, %v185_v61  ;;  %v873_v62 = vld [vmem:[%s1371_s4] sm:$0xff] }
  0x75   :  { %798 = vmatpush.msra.mxu0 %v674_v6  ;;  %969 = vmatpush.msra.mxu2 %v674_v6  ;;  %v180_v27 = vmul.f32 %v179_v22, %v175_v35  ;;  %v187_v28 = vmul.f32 %v186_v26, %v175_v35 }
  0x76   :  { %970 = vmatpush.msra.mxu3 %v674_v6  ;;  %1002 = vset.pattern.permute.xlu0 %v1038_v2 }
  0x77   :  { %v181_v24 = vadd.f32 1.0, %v180_v27  ;;  %v188_v30 = vadd.f32 1.0, %v187_v28  ;;  %726 = vperm.xlu0 %1002, %v712_v10   ;;  %830 = vperm.xlu1 %1003, %v682_v39  }
  0x78   :  { %1004 = vset.pattern.permute.xlu2 %v1038_v2 }
  0x79   :  { %v189_v4 = vmul.f32 %v188_v30, %v173_v11  ;;  %v197_v34 = vxor.u32 2147483648, %v181_v24  ;;  %721 = vperm.xlu2 %1004, %v711_v33  }
  0x7a   :  { %v855_v2 = vpop.permute.xlu1 %854 }
  0x7b   :  { %v194_v36 = vxor.u32 2147483648, %v189_v4  ;;  %v198_v19 = vsel %vm196_vm3, %v197_v34, %v189_v4  ;;  %v507_v7 = vsel %vm505_vm4, %v197_v34, %v189_v4 }
  0x7d   :  { %v195_v38 = vsel %vm193_vm6, %v181_v24, %v194_v36  ;;  %v504_v32 = vsel %vm502_vm7, %v181_v24, %v194_v36 }
  0x7e   :  { %v199_v57 = vsel %vm192_vm5, %v195_v38, %v198_v19  ;;  %v508_v40 = vsel %vm501_vm8, %v504_v32, %v507_v7 }
  0x7f   :  { %v1320_v41 = vsel %vm190_vm9, nan, %v199_v57  ;;  %v1322_v42 = vsel %vm190_vm9, nan, %v508_v40 }
  0x80   :  { %v669_v43 = vmul.f32 %v1309_v49, %v1320_v41  ;;  %v671_v45 = vmul.f32 %v1314_v48, %v1322_v42 }
  0x81   :  { %1005 = vset.pattern.permute.xlu2 %v1037_v1  ;;  %v874_v1 = vld [vmem:[%s1371_s4 + $0x8] sm:$0xff] }
  0x82   :  { %v673_v46 = vadd.f32 %v671_v45, %v669_v43  ;;  %826 = vperm.xlu2 %1005, %v681_v47   ;;  %v675_v43 = vmul.f32 %v1314_v48, %v1320_v41  ;;  %v677_v45 = vmul.f32 %v1309_v49, %v1322_v42 }
  0x84   :  { %799 = vmatpush.msra.mxu0 %v673_v46  ;;  %971 = vmatpush.msra.mxu2 %v673_v46  ;;  %v679_v33 = vsub.f32 %v675_v43, %v677_v45 }
  0x85   :  { %972 = vmatpush.msra.mxu3 %v673_v46  ;;  %959 = vmatmul.msk.f32.vlgmr.msra.gmra.mxu0 %vm759_vm10, %v681_v47 }
  0x86   :  { %962 = vmatmul.msk.f32.vlgmr.msra.gmra.mxu2 %vm759_vm10, %v1238_v31  ;;  %965 = vmatmul.msk.f32.vlgmr.msra.gmra.mxu3 %vm759_vm10, %v1243_v14  ;;  %v747_v14 = vpop.permute.xlu1 %746 }
  0x8d   :  { %960 = vmatmul.msk.f32.gmra.mxu0 %vm759_vm10, %v682_v39 }
  0x8e   :  { %963 = vmatmul.msk.f32.gmra.mxu2 %vm759_vm10, %v1285_v18  ;;  %966 = vmatmul.msk.f32.gmra.mxu3 %vm759_vm10, %v1084_v0 }
  0x95   :  { %961 = vmatmul.msk.f32.gmra.mxu0 %vm759_vm10, %v1290_v37 }
  0x96   :  { %964 = vmatmul.msk.f32.gmra.mxu2 %vm759_vm10, %v1093_v3  ;;  %v1046_v3 = vmov 64  }
  0x97   :  { %1007 = vset.pattern.permute.xlu1 %v1046_v3  ;;  %1006 = vset.pattern.permute.xlu0 %v1046_v3 }
  0x98   :  { %882 = vperm.xlu1 %1007, %v874_v1   ;;  %877 = vperm.xlu0 %1006, %v873_v62  }
  0xad   :  { %v851_v9 = vpop.permute.xlu2 %850 }
  0xb9   :  { %v742_v31 = vpop.permute.xlu2 %741 }
  0xc2   :  { %v843_v53 = vpop.permute.xlu2 %842 }
  0xc7   :  { %v737_v5 = vpop.permute.xlu1 %736 }
  0xca   :  { %v839_v13 = vpop.permute.xlu2 %838 }
  0xce   :  { %v757_v20 = vpop.permute.xlu0 %756 }
  0xd3   :  { %v722_v29 = vpop.permute.xlu2 %721 }
  0xd6   :  { %v752_v55 = vpop.permute.xlu0 %751 }
  0xd7   :  { %v732_v63 = vpop.permute.xlu1 %731 }
  0xdc   :  { %v827_v7 = vpop.permute.xlu2 %826 }
  0xdf   :  { %v847_v35 = vpop.permute.xlu0 %846 }
  0xe0   :  { %v835_v51 = vpop.permute.xlu1 %834 }
  0xe9   :  { %v727_v26 = vpop.permute.xlu0 %726  ;;  %v831_v4 = vpop.permute.xlu1 %830 }
 0x102   :  { %v801_v54 = vpop.f32.mrf.mxu0 }
 0x103   :  { %v802_v34 = vadd.f32 %v801_v54, %v722_v29 }
 0x105   :  { %v857_v39 = vadd.f32 %v827_v7, %v802_v34 }
 0x107   :  { %v865_v10 = vmax.f32 %v857_v39, 0.0 }
 0x109   :  { %v810_v59 = vpop.f32.mrf.mxu2  ;;  %v819_v0 = vpop.f32.mrf.mxu3 }
 0x10a   :  { %v804_v11 = vpop.f32.mrf.mxu0  ;;  %v820_v6 = vadd.f32 %v819_v0, %v752_v55  ;;  %v811_v61 = vadd.f32 %v810_v59, %v737_v5  ;;  %v878_v46 = vpop.permute.xlu0 %877 }
 0x10b   :  { %v805_v28 = vadd.f32 %v804_v11, %v727_v26 }
 0x10c   :  { %v863_v37 = vadd.f32 %v851_v9, %v820_v6  ;;  %v860_v30 = vadd.f32 %v839_v13, %v811_v61 }
 0x10d   :  { %v858_v38 = vadd.f32 %v831_v4, %v805_v28 }
 0x10e   :  { %v871_v60 = vmax.f32 %v863_v37, 0.0  ;;  %v868_v32 = vmax.f32 %v860_v30, 0.0 }
 0x10f   :  { %v866_v40 = vmax.f32 %v858_v38, 0.0 }
 0x111   :  { %v813_v12 = vpop.f32.mrf.mxu2  ;;  %v822_v16 = vpop.f32.mrf.mxu3 }
 0x112   :  { %v823_v17 = vadd.f32 %v822_v16, %v757_v20  ;;  %v814_v8 = vadd.f32 %v813_v12, %v742_v31  ;;  %v807_v52 = vpop.f32.mrf.mxu0  ;;  %v678_v31 = vmul.f32 %v1248_v50, %v1270_v58 }
 0x113   :  { %v808_v23 = vadd.f32 %v807_v52, %v732_v63 }
 0x114   :  { %v864_v18 = vadd.f32 %v855_v2, %v823_v17  ;;  %v861_v27 = vadd.f32 %v843_v53, %v814_v8  ;;  %v676_v2 = vmul.f32 %v1253_v15, %v1266_v56 }
 0x115   :  { %v859_v19 = vadd.f32 %v835_v51, %v808_v23 }
 0x116   :  { %v872_v44 = vmax.f32 %v864_v18, 0.0  ;;  %v869_v36 = vmax.f32 %v861_v27, 0.0  ;;  %v680_v53 = vsub.f32 %v676_v2, %v678_v31 }
 0x117   :  { %v867_v57 = vmax.f32 %v859_v19, 0.0 }
 0x118   :  { %898 = vmatpush.msra.mxu1 %v872_v44  ;;  %973 = vmatpush.msrb.mxu3 %v872_v44 }
 0x119   :  { %v816_v21 = vpop.f32.mrf.mxu2 }
 0x11a   :  { %v817_v22 = vadd.f32 %v816_v21, %v747_v14  ;;  %899 = vmatpush.msra.mxu1 %v871_v60  ;;  %974 = vmatpush.msrb.mxu3 %v871_v60  ;;  %v883_v14 = vpop.permute.xlu1 %882 }
 0x11c   :  { %v862_v25 = vadd.f32 %v847_v35, %v817_v22 }
 0x11e   :  { %v870_v24 = vmax.f32 %v862_v25, 0.0 }
 0x120   :  { %900 = vmatpush.msra.mxu1 %v870_v24  ;;  %975 = vmatpush.msrb.mxu3 %v870_v24 }
 0x122   :  { %901 = vmatpush.msra.mxu1 %v869_v36  ;;  %976 = vmatpush.msrb.mxu3 %v869_v36 }
 0x124   :  { %902 = vmatpush.msra.mxu1 %v868_v32  ;;  %977 = vmatpush.msrb.mxu3 %v868_v32 }
 0x126   :  { %903 = vmatpush.msra.mxu1 %v867_v57  ;;  %978 = vmatpush.msrb.mxu3 %v867_v57 }
 0x128   :  { %904 = vmatpush.msra.mxu1 %v866_v40  ;;  %979 = vmatpush.msrb.mxu3 %v866_v40 }
 0x12a   :  { %905 = vmatpush.msra.mxu1 %v865_v10  ;;  %980 = vmatpush.msrb.mxu3 %v865_v10 }
 0x12b   :  { %968 = vmatmul.msk.f32.vlgmr.msrb.gmra.mxu3 %vm885_vm11, %v874_v1  ;;  %967 = vmatmul.msk.f32.vlgmr.msra.gmra.mxu1 %vm885_vm11, %v873_v62 }
 0x1a8   :  { %v907_v47 = vpop.f32.mrf.mxu1 }
 0x1a9   :  { %v908_v9 = vadd.f32 %v907_v47, %v878_v46 }
 0x1ab   :  { %v913_v20 = vsub.f32 %v908_v9, %v679_v33 }
 0x1ad   :  { %v915_v55 = vmul.f32 %v913_v20, %v913_v20 }
 0x1ae   :  { %v910_v5 = vpop.f32.mrf.mxu3 }
 0x1af   :  { %v911_v54 = vadd.f32 %v910_v5, %v883_v14 }
 0x1b1   :  { %v914_v48 = vsub.f32 %v911_v54, %v680_v53 }
 0x1b3   :  { %v916_v41 = vmul.f32 %v914_v48, %v914_v48 }
 0x1b5   :  { %v917_v59 = vadd.f32 %v916_v41, %v915_v55 }
 0x1b7   :  { %918 = vadd.xlane.f32.xlu2 %v917_v59 }
 0x22a   :  { %v919_v49 = vpop.xlane.xlu2 %918 }
 0x22b   :  { %v920_v42 = vrot.slane %v919_v49, 4 }
 0x22d   :  { %v921_v0 = vadd.f32 %v920_v42, %v919_v49 }
 0x22f   :  { %v922_v1 = vrot.slane %v921_v0, 2 }
 0x231   :  { %v923_v62 = vadd.f32 %v922_v1, %v921_v0 }
 0x233   :  { %v924_v3 = vrot.slane %v923_v62, 1 }
 0x235   :  { %v925_v15 = vadd.f32 %v924_v3, %v923_v62 }
 0x237   :  { %981 = vpush %v925_v15 }
 0x268   :  { %s982_s0 = spop %981 }
 0x269   :  { %s927_s25 = smul.f32 0.00048828125, %s982_s0 }
 0x26b   :  { %929 = sst [smem:[#allocation5]] %s927_s25 }
 0x26c   :  { %938 = dma.smem_to_hbm %s1047_s26, 16, %s936_s24, [#allocation3]  }
 0x26d   :  { %1034 = dma.done.wait [#allocation3], 16  }
 0x26e   :  { %1035 = vsyncadd [#allocation3], 4294967280 }
 0x26f   :  { %943 = sfence }
 0x270   :  { %944 = vsyncpa [#allocation3], 1 }
 0x271   :  { %945 = vsyncpa [#allocation4], 1 }

</bundles_post_ra>
